<compile_context>
chip_gen: v5e
topology: v5e:2x2
jax: 0.10.0
libtpu: 0.0.40
codegen_flags: <defaults>
</compile_context>

<pallas_src>
import functools

import jax
import jax.numpy as jnp
from jax.experimental import pallas as pl
from jax.experimental.pallas import tpu as pltpu

_MXU_DTYPE = jnp.bfloat16                 # MXU operand dtype (f32 accumulation)
_VMEM_LIMIT_BYTES = 32 * 1024 * 1024      # explicit scoped-VMEM budget (fits v7x)


def _round_up(x, m):
    return ((x + m - 1) // m) * m


# ----------------------------------------------------------------------------
# Kernel 1: fused linear  Y = act(X @ W + b)
# ----------------------------------------------------------------------------
def _linear_act_kernel(x_ref, w_ref, b_ref, o_ref, *, act):
    x = x_ref[...].astype(_MXU_DTYPE)                 # bf16 MXU operand
    y = jnp.dot(x, w_ref[...], preferred_element_type=jnp.float32)
    y = y + b_ref[...]                                # f32 bias / epilogue
    if act == "relu":
        y = jnp.maximum(y, 0.0)
    o_ref[...] = y.astype(o_ref.dtype)


def linear_pallas(x, w, b=None, act=None, *, tile_m=512, out_dtype=None):
    """y = act(x @ w + b) with x:(M,K), w:(K,N), b:(N,) or None."""
    M, K = x.shape
    K2, N = w.shape
    assert K == K2
    out_dtype = out_dtype or x.dtype

    # Lane-dense output: pad N up to a multiple of 128 (zero weight/bias columns).
    n_pad = _round_up(max(N, 128), 128)
    # Ceil-div row grid; keep the row tile a multiple of 8 and as large as possible.
    tile = max(8, min(tile_m, _round_up(M, 8)))
    m_pad = _round_up(M, tile)

    x_p = jnp.pad(x, ((0, m_pad - M), (0, 0)))
    w_p = jnp.pad(w, ((0, 0), (0, n_pad - N))).astype(_MXU_DTYPE)
    b_arr = b if b is not None else jnp.zeros((N,), jnp.float32)
    b_p = jnp.pad(b_arr.astype(jnp.float32), (0, n_pad - N)).reshape(1, n_pad)

    out = pl.pallas_call(
        functools.partial(_linear_act_kernel, act=act),
        out_shape=jax.ShapeDtypeStruct((m_pad, n_pad), out_dtype),
        grid_spec=pltpu.PrefetchScalarGridSpec(
            num_scalar_prefetch=0,
            grid=(m_pad // tile,),
            in_specs=[
                pl.BlockSpec((tile, K), lambda i: (i, 0)),
                pl.BlockSpec((K, n_pad), lambda i: (0, 0)),
                pl.BlockSpec((1, n_pad), lambda i: (0, 0)),
            ],
            out_specs=pl.BlockSpec((tile, n_pad), lambda i: (i, 0)),
        ),
        compiler_params=pltpu.CompilerParams(
            dimension_semantics=("parallel",),
            vmem_limit_bytes=_VMEM_LIMIT_BYTES),
    )(x_p, w_p, b_p)
    return out[:M, :N]


# ----------------------------------------------------------------------------
# Kernel 2: LayerNorm over the channel (last) dim
# ----------------------------------------------------------------------------
def _layernorm_kernel(x_ref, g_ref, b_ref, o_ref, *, eps, inv_c):
    x = x_ref[...].astype(jnp.float32)
    # One-pass statistics (independent XLU reductions); padded lanes are zero so
    # they do not perturb the sums; divide by the real channel count.
    s = jnp.sum(x, axis=-1, keepdims=True)
    ss = jnp.sum(x * x, axis=-1, keepdims=True)
    mean = s * inv_c
    var = jnp.maximum(ss * inv_c - mean * mean, 0.0)   # clamp (cancellation guard)
    xn = (x - mean) * jax.lax.rsqrt(var + eps)
    o_ref[...] = (xn * g_ref[...] + b_ref[...]).astype(o_ref.dtype)


def layernorm_pallas(x, gamma, beta, *, eps=1e-5, tile_m=512):
    """LayerNorm over the last dim of x:(M, C).  eps fixed at 1e-5 (PyTorch default)."""
    M, C = x.shape
    c_pad = _round_up(max(C, 128), 128)                # lane-dense stores
    tile = max(8, min(tile_m, _round_up(M, 8)))
    m_pad = _round_up(M, tile)

    x_p = jnp.pad(x, ((0, m_pad - M), (0, c_pad - C)))
    g_p = jnp.pad(gamma.astype(jnp.float32), (0, c_pad - C)).reshape(1, c_pad)
    b_p = jnp.pad(beta.astype(jnp.float32), (0, c_pad - C)).reshape(1, c_pad)

    out = pl.pallas_call(
        functools.partial(_layernorm_kernel, eps=eps, inv_c=1.0 / C),
        out_shape=jax.ShapeDtypeStruct((m_pad, c_pad), x.dtype),
        grid_spec=pltpu.PrefetchScalarGridSpec(
            num_scalar_prefetch=0,
            grid=(m_pad // tile,),
            in_specs=[
                pl.BlockSpec((tile, c_pad), lambda i: (i, 0)),
                pl.BlockSpec((1, c_pad), lambda i: (0, 0)),
                pl.BlockSpec((1, c_pad), lambda i: (0, 0)),
            ],
            out_specs=pl.BlockSpec((tile, c_pad), lambda i: (i, 0)),
        ),
        compiler_params=pltpu.CompilerParams(
            dimension_semantics=("parallel",),
            vmem_limit_bytes=_VMEM_LIMIT_BYTES),
    )(x_p, g_p, b_p)
    return out[:M, :C]


# ----------------------------------------------------------------------------
# Kernel 3: LSTM time recurrence (PyTorch gate order i, f, g, o)
# ----------------------------------------------------------------------------
def _lstm_rec_kernel(xp_ref, whh_ref, out_ref, h_scr, c_scr):
    t = pl.program_id(0)

    @pl.when(t == 0)
    def _():
        h_scr[...] = jnp.zeros_like(h_scr)
        c_scr[...] = jnp.zeros_like(c_scr)

    hdim = h_scr.shape[1]
    gates = xp_ref[0].astype(jnp.float32) + jnp.dot(
        h_scr[...].astype(_MXU_DTYPE), whh_ref[...],
        preferred_element_type=jnp.float32)
    i_g = jax.nn.sigmoid(gates[:, 0:hdim])
    f_g = jax.nn.sigmoid(gates[:, hdim:2 * hdim])
    g_g = jnp.tanh(gates[:, 2 * hdim:3 * hdim])
    o_g = jax.nn.sigmoid(gates[:, 3 * hdim:4 * hdim])
    c = f_g * c_scr[...] + i_g * g_g
    h = o_g * jnp.tanh(c)
    c_scr[...] = c
    h_scr[...] = h
    out_ref[0] = h.astype(out_ref.dtype)


def lstm_pallas(x, w_ih, w_hh, b_ih, b_hh):
    """Single-layer batch-first LSTM.  x:(B,T,I); PyTorch weight layout."""
    B, T, I = x.shape
    H = w_hh.shape[1]
    # Input projection for all time steps at once (Pallas fused matmul, bias folded).
    xp = linear_pallas(x.reshape(B * T, I), w_ih.T, b_ih + b_hh,
                       out_dtype=jnp.float32)
    xp = xp.reshape(B, T, 4 * H).transpose(1, 0, 2)        # (T, B, 4H) — tiny

    h_seq = pl.pallas_call(
        _lstm_rec_kernel,
        out_shape=jax.ShapeDtypeStruct((T, B, H), jnp.float32),
        grid_spec=pltpu.PrefetchScalarGridSpec(
            num_scalar_prefetch=0,
            grid=(T,),
            in_specs=[
                pl.BlockSpec((1, B, 4 * H), lambda t: (t, 0, 0)),
                pl.BlockSpec((H, 4 * H), lambda t: (0, 0)),
            ],
            out_specs=pl.BlockSpec((1, B, H), lambda t: (t, 0, 0)),
            scratch_shapes=[pltpu.VMEM((B, H), jnp.float32),
                            pltpu.VMEM((B, H), jnp.float32)],
        ),
        compiler_params=pltpu.CompilerParams(
            dimension_semantics=("arbitrary",),   # sequential recurrence
            vmem_limit_bytes=_VMEM_LIMIT_BYTES),
    )(xp, w_hh.T.astype(_MXU_DTYPE))
    return h_seq.transpose(1, 0, 2)                         # (B, T, H)


# ----------------------------------------------------------------------------
# Kernel 4: fused per-(batch, head) softmax attention
# ----------------------------------------------------------------------------
def _attn_kernel(q_ref, k_ref, v_ref, o_ref, *, scale):
    q = q_ref[...].astype(jnp.float32)       # (1, Nq, d)
    k = k_ref[...].astype(jnp.float32)       # (1, L,  d)
    v = v_ref[...].astype(jnp.float32)
    s = jnp.einsum('bqd,bkd->bqk', q, k,
                   preferred_element_type=jnp.float32) * scale
    m = jnp.max(s, axis=-1, keepdims=True)
    p = jnp.exp(s - m)
    inv = pl.reciprocal(jnp.sum(p, axis=-1, keepdims=True), approx=True)
    o = jnp.einsum('bqk,bkd->bqd', p * inv, v,
                   preferred_element_type=jnp.float32)
    o_ref[...] = o.astype(o_ref.dtype)


def attention_head_pallas(q, k, v, scale):
    """q:(B,h,N,d), k/v:(B,h,L,d) -> (B,h,N,d)."""
    B, h, N, d = q.shape
    L = k.shape[2]
    qf, kf, vf = (t.reshape(B * h, t.shape[2], d) for t in (q, k, v))
    out = pl.pallas_call(
        functools.partial(_attn_kernel, scale=scale),
        out_shape=jax.ShapeDtypeStruct((B * h, N, d), jnp.float32),
        grid_spec=pltpu.PrefetchScalarGridSpec(
            num_scalar_prefetch=0,
            grid=(B * h,),
            in_specs=[
                pl.BlockSpec((1, N, d), lambda i: (i, 0, 0)),
                pl.BlockSpec((1, L, d), lambda i: (i, 0, 0)),
                pl.BlockSpec((1, L, d), lambda i: (i, 0, 0)),
            ],
            out_specs=pl.BlockSpec((1, N, d), lambda i: (i, 0, 0)),
        ),
        compiler_params=pltpu.CompilerParams(
            dimension_semantics=("parallel",),
            vmem_limit_bytes=_VMEM_LIMIT_BYTES),
    )(qf, kf, vf)
    return out.reshape(B, h, N, d)


# ----------------------------------------------------------------------------
# Plain-JAX helpers (spatial convs / tiny poolings stay in XLA)
# ----------------------------------------------------------------------------
# TODO(synk): 3x3 / 7x7 / depthwise-3x3 spatial convolutions are kept on XLA's
# conv (lax.conv_general_dilated); at these tiny shapes there is no clean or
# beneficial Pallas equivalent.
def conv2d_nchw(x, w, b=None, *, padding=(0, 0), stride=(1, 1), groups=1):
    out = jax.lax.conv_general_dilated(
        x, w, window_strides=stride,
        padding=((padding[0], padding[0]), (padding[1], padding[1])),
        dimension_numbers=("NCHW", "OIHW", "NCHW"),
        feature_group_count=groups)
    if b is not None:
        out = out + b.reshape(1, -1, 1, 1)
    return out


def batchnorm2d(x, gamma, beta, eps=1e-5):
    # BatchNorm2d as the module computes it in its default (train-mode) state:
    # per-channel batch statistics + affine.
    mean = jnp.mean(x, axis=(0, 2, 3), keepdims=True)
    var = jnp.mean((x - mean) ** 2, axis=(0, 2, 3), keepdims=True)
    return ((x - mean) * jax.lax.rsqrt(var + eps)
            * gamma.reshape(1, -1, 1, 1) + beta.reshape(1, -1, 1, 1))


def channel_attention(x, w1, w2):
    # AdaptiveAvg/MaxPool(1) -> 1x1 convs (== 2-row matmuls) -> sigmoid.  Too tiny
    # for a Pallas kernel to help (B=2 rows); kept in plain JAX.
    avg = jnp.mean(x, axis=(2, 3))
    mx = jnp.max(x, axis=(2, 3))

    def fc(v):
        return jnp.maximum(v @ w1, 0.0) @ w2

    return jax.nn.sigmoid(fc(avg) + fc(mx))[:, :, None, None]


def spatial_attention(x, w):
    avg = jnp.mean(x, axis=1, keepdims=True)
    mx = jnp.max(x, axis=1, keepdims=True)
    cat = jnp.concatenate([avg, mx], axis=1)
    return jax.nn.sigmoid(conv2d_nchw(cat, w, padding=(3, 3)))


def patchify(x, k):
    """Non-overlapping kxk patches of NCHW x -> rows (B*Hk*Wk, C*k*k)."""
    B, C, H, W = x.shape
    xp = x.reshape(B, C, H // k, k, W // k, k)
    xp = jnp.transpose(xp, (0, 2, 4, 1, 3, 5))
    return xp.reshape(B * (H // k) * (W // k), C * k * k)


def local_enhance(v, w, b, h, w_sp):
    """The local_conv{1,2} depthwise-3x3 enhancement of v:(B, nh2, n, hd)."""
    B, nh2, n, hd = v.shape
    c_half = nh2 * hd
    t = v.transpose(0, 2, 1, 3).reshape(B, n, c_half)
    t = t.transpose(0, 2, 1).reshape(B, c_half, h, w_sp)
    t = conv2d_nchw(t, w, b, padding=(1, 1), groups=c_half)
    t = t.reshape(B, c_half, n).reshape(B, nh2, hd, n).transpose(0, 1, 3, 2)
    return t


# ----------------------------------------------------------------------------
# Attention_ssa (dim=64, num_heads=4, sr_ratio=4)
# ----------------------------------------------------------------------------
def attention_ssa(p, x, H, W):
    B, N, C = x.shape
    nh, hd = 4, C // 4
    scale = hd ** -0.5

    q = linear_pallas(x.reshape(B * N, C), p["q_w"])            # bias=False
    q = q.reshape(B, N, nh, hd).transpose(0, 2, 1, 3)           # (B,4,N,hd)

    x_ = x.transpose(0, 2, 1).reshape(B, C, H, W)
    # sr1 (4x4/s4) and sr2 (2x2/s2) convs as Pallas patch-matmuls, then
    # Pallas LayerNorm and exact GELU.
    x1_ = linear_pallas(patchify(x_, 4), p["sr1_w"], p["sr1_b"])
    x1_ = jax.nn.gelu(layernorm_pallas(x1_, p["norm1_g"], p["norm1_b"]),
                      approximate=False)
    x2_ = linear_pallas(patchify(x_, 2), p["sr2_w"], p["sr2_b"])
    x2_ = jax.nn.gelu(layernorm_pallas(x2_, p["norm2_g"], p["norm2_b"]),
                      approximate=False)

    n1 = (H // 4) * (W // 4)
    n2 = (H // 2) * (W // 2)
    kv1 = linear_pallas(x1_, p["kv1_w"]).reshape(B, n1, 2, 2, hd)
    kv1 = kv1.transpose(2, 0, 3, 1, 4)                          # (2,B,2,n1,hd)
    k1, v1 = kv1[0], kv1[1]
    kv2 = linear_pallas(x2_, p["kv2_w"]).reshape(B, n2, 2, 2, hd)
    kv2 = kv2.transpose(2, 0, 3, 1, 4)
    k2, v2 = kv2[0], kv2[1]

    v1 = v1 + local_enhance(v1, p["lc1_w"], p["lc1_b"], H // 4, W // 4)
    v2 = v2 + local_enhance(v2, p["lc2_w"], p["lc2_b"], H // 2, W // 2)

    x1p = attention_head_pallas(q[:, :2], k1, v1, scale)
    x2p = attention_head_pallas(q[:, 2:], k2, v2, scale)
    x1p = x1p.transpose(0, 2, 1, 3).reshape(B, N, C // 2)
    x2p = x2p.transpose(0, 2, 1, 3).reshape(B, N, C // 2)
    xo = jnp.concatenate([x1p, x2p], axis=-1)
    xo = linear_pallas(xo.reshape(B * N, C), p["proj_w"], p["proj_b"])
    return xo.reshape(B, N, C)


# ----------------------------------------------------------------------------
# Encoder_Dm forward
# ----------------------------------------------------------------------------
def encoder_dm_forward(p, oa):
    B = oa.shape[0]

    x = conv2d_nchw(oa, p["conv1_w"], p["conv1_b"], padding=(1, 1))
    x = jnp.maximum(batchnorm2d(x, p["bn1_g"], p["bn1_b"]), 0.0)
    x = conv2d_nchw(x, p["conv2_w"], p["conv2_b"], padding=(1, 1))
    x = jnp.maximum(batchnorm2d(x, p["bn2_g"], p["bn2_b"]), 0.0)
    x = conv2d_nchw(x, p["conv3_w"], p["conv3_b"], padding=(1, 1))
    x = jnp.maximum(batchnorm2d(x, p["bn3_g"], p["bn3_b"]), 0.0)

    # conv4 ((26,1) kernel collapses H) fused with the following ReLU as one
    # Pallas matmul: rows = (batch, width), K = C*KH = 832.
    Bc, Cc, Hc, Wc = x.shape
    xcol = jnp.transpose(x, (0, 3, 1, 2)).reshape(Bc * Wc, Cc * Hc)
    w4 = p["conv4_w"].reshape(64, Cc * Hc).T
    y = linear_pallas(xcol, w4, p["conv4_b"], act="relu")
    x = y.reshape(Bc, Wc, 64).transpose(0, 2, 1)[:, :, None, :]   # (B,64,1,63)
    x = batchnorm2d(x, p["bn4_g"], p["bn4_b"])

    residual = x
    xr = jnp.maximum(x, 0.0)
    xr = channel_attention(xr, p["ca_w1"], p["ca_w2"]) * xr
    xr = spatial_attention(xr, p["sa_w"]) * xr
    x = xr + residual
    x = x[:, :, 0, :]                                             # squeeze(2)

    # CustomRNN (self.blstm).  self.lstm / self.fc / self.dropout /
    # CustomRNN.max_pooling are built by the module but unused in forward().
    h1 = lstm_pallas(x, p["rnn1_w_ih"], p["rnn1_w_hh"],
                     p["rnn1_b_ih"], p["rnn1_b_hh"])              # (B,64,128)
    feats = h1[:, 3::4, :]                                        # (B,16,128)
    s3 = jnp.concatenate([feats[:, i::13] for i in range(13)], axis=1)
    s6 = jnp.concatenate([feats[:, i::16] for i in range(16)], axis=1)
    s9 = jnp.concatenate([feats[:, i::19] for i in range(19)], axis=1)
    # Batch the four independent rnn2 invocations along the batch axis: one
    # Pallas LSTM launch with B=8 (full sublane use) instead of four with B=2.
    stacked = jnp.concatenate([feats, s3, s6, s9], axis=0)        # (4B,16,128)
    o = lstm_pallas(stacked, p["rnn2_w_ih"], p["rnn2_w_hh"],
                    p["rnn2_b_ih"], p["rnn2_b_hh"])               # (4B,16,256)
    o1, o3, o6, o9 = jnp.split(o, 4, axis=0)
    x = jnp.concatenate([o1, o3, o6, o9], axis=1)                 # (B,64,256)

    x = jnp.transpose(x, (0, 2, 1))                               # (B,256,64)
    side = int(round(float(x.shape[1]) ** 0.5))
    x = attention_ssa(p, x, side, side)
    x = jnp.maximum(x, 0.0)
    # unsqueeze(2) + AdaptiveAvgPool2d(1) + reshape == mean over the last axis.
    return jnp.mean(x, axis=2)                                    # (B,256)


# ----------------------------------------------------------------------------
# Deterministic parameters
# ----------------------------------------------------------------------------
def init_params(key):
    keys = iter(jax.random.split(key, 24))

    def nrm(shape, std):
        return jax.random.normal(next(keys), shape, dtype=jnp.float32) * std

    p = {}
    p["conv1_w"] = nrm((8, 3, 3, 3), 0.20);   p["conv1_b"] = jnp.zeros((8,))
    p["conv2_w"] = nrm((16, 8, 3, 3), 0.12);  p["conv2_b"] = jnp.zeros((16,))
    p["conv3_w"] = nrm((32, 16, 3, 3), 0.08); p["conv3_b"] = jnp.zeros((32,))
    p["conv4_w"] = nrm((64, 32, 26, 1), 0.035); p["conv4_b"] = jnp.zeros((64,))
    for i, c in zip(range(1, 5), (8, 16, 32, 64)):
        p[f"bn{i}_g"] = jnp.ones((c,)); p[f"bn{i}_b"] = jnp.zeros((c,))
    p["ca_w1"] = nrm((64, 4), 0.125)          # ChannelAttention fc (1x1 convs)
    p["ca_w2"] = nrm((4, 64), 0.5)
    p["sa_w"] = nrm((1, 2, 7, 7), 0.1)        # SpatialAttention 7x7 conv
    # CustomRNN LSTMs, PyTorch layout: W_ih (4H,I), W_hh (4H,H), gates i,f,g,o.
    p["rnn1_w_ih"] = nrm((512, 63), 0.09);  p["rnn1_w_hh"] = nrm((512, 128), 0.09)
    p["rnn1_b_ih"] = jnp.zeros((512,));     p["rnn1_b_hh"] = jnp.zeros((512,))
    p["rnn2_w_ih"] = nrm((1024, 128), 0.06); p["rnn2_w_hh"] = nrm((1024, 256), 0.06)
    p["rnn2_b_ih"] = jnp.zeros((1024,));     p["rnn2_b_hh"] = jnp.zeros((1024,))
    # Attention_ssa(dim=64, num_heads=4, sr_ratio=4); linears stored (in, out).
    p["q_w"] = nrm((64, 64), 0.02)
    p["kv1_w"] = nrm((64, 64), 0.02)
    p["kv2_w"] = nrm((64, 64), 0.02)
    p["proj_w"] = nrm((64, 64), 0.02); p["proj_b"] = jnp.zeros((64,))
    # sr1/sr2 stride-k convs stored pre-flattened as (C*k*k, C_out) matmul weights.
    p["sr1_w"] = nrm((64 * 4 * 4, 64), 0.04); p["sr1_b"] = jnp.zeros((64,))
    p["sr2_w"] = nrm((64 * 2 * 2, 64), 0.08); p["sr2_b"] = jnp.zeros((64,))
    p["norm1_g"] = jnp.ones((64,)); p["norm1_b"] = jnp.zeros((64,))
    p["norm2_g"] = jnp.ones((64,)); p["norm2_b"] = jnp.zeros((64,))
    p["lc1_w"] = nrm((32, 1, 3, 3), 0.2); p["lc1_b"] = jnp.zeros((32,))
    p["lc2_w"] = nrm((32, 1, 3, 3), 0.2); p["lc2_b"] = jnp.zeros((32,))
    return p


if __name__ == "__main__":
    key = jax.random.PRNGKey(0)
    kp, kx, kc1, kc2, kc3 = jax.random.split(key, 5)
    params = init_params(kp)
    # Shapes implied by the module: conv4's (26,1) kernel needs H=26 and the
    # LSTM input_size=63 needs W=63; attention then sees N=256 tokens of dim 64.
    oa = jax.random.normal(kx, (2, 3, 26, 63), dtype=jnp.float32)

    # Unit check of the fused Pallas linear kernel (exercises M%8!=0 and N<128
    # padding paths; bf16 MXU operands -> loose tolerance).
    xm = jax.random.normal(kc1, (37, 96), dtype=jnp.float32)
    wm = jax.random.normal(kc2, (96, 80), dtype=jnp.float32) * 0.1
    bm = jax.random.normal(kc3, (80,), dtype=jnp.float32) * 0.1
    got = linear_pallas(xm, wm, bm, act="relu")
    want = jnp.maximum(xm @ wm + bm, 0.0)
    err = float(jnp.max(jnp.abs(got - want)))
    assert got.shape == want.shape and err < 5e-2, err

    emb = jax.jit(encoder_dm_forward)(params, oa)
    emb = jax.block_until_ready(emb)
    assert emb.shape == (2, 256), emb.shape
    assert bool(jnp.all(jnp.isfinite(emb)))
    print("KERNEL_OK")
</pallas_src>

<mosaic_0001>
module attributes {stable_mosaic.version = 11 : i64} {
  func.func @_linear_act_kernel(%arg0: i32, %arg1: memref<40x96xf32, #tpu.memory_space<vmem>>, %arg2: memref<96x128xbf16, #tpu.memory_space<vmem>>, %arg3: memref<1x128xf32, #tpu.memory_space<vmem>>, %arg4: memref<40x128xf32, #tpu.memory_space<vmem>>) attributes {dimension_semantics = [#tpu.dimension_semantics<parallel>], iteration_bounds = array<i64: 1>, scalar_prefetch = 0 : i64, scratch_operands = 0 : i64, tpu.core_type = #tpu.core_type<tc>, window_params = [{transform_indices = @transform_0, window_bounds = array<i64: 40, 96>}, {pipeline_mode = #tpu.pipeline_mode<synchronous>, transform_indices = @transform_1, window_bounds = array<i64: 96, 128>}, {pipeline_mode = #tpu.pipeline_mode<synchronous>, transform_indices = @transform_2, window_bounds = array<i64: 1, 128>}, {transform_indices = @transform_3, window_bounds = array<i64: 40, 128>}]} {
    %c0 = arith.constant 0 : index
    %c0_0 = arith.constant 0 : index
    %0 = vector.load %arg1[%c0, %c0_0] : memref<40x96xf32, #tpu.memory_space<vmem>>, vector<40x96xf32>
    %1 = arith.truncf %0 : vector<40x96xf32> to vector<40x96xbf16>
    %c0_1 = arith.constant 0 : index
    %c0_2 = arith.constant 0 : index
    %2 = vector.load %arg2[%c0_1, %c0_2] : memref<96x128xbf16, #tpu.memory_space<vmem>>, vector<96x128xbf16>
    %cst = arith.constant dense<0.000000e+00> : vector<40x128xf32>
    %3 = tpu.matmul %1, %2, %cst {dimension_numbers = #tpu.dot_dimension_numbers<[1], [0], [0], [1], [0, 0, 1, 1], [], []>} : vector<40x96xbf16>, vector<96x128xbf16>, vector<40x128xf32> -> vector<40x128xf32>
    %c0_3 = arith.constant 0 : index
    %c0_4 = arith.constant 0 : index
    %4 = vector.load %arg3[%c0_3, %c0_4] : memref<1x128xf32, #tpu.memory_space<vmem>>, vector<1x128xf32>
    %5 = vector.broadcast %4 : vector<1x128xf32> to vector<40x128xf32>
    %6 = arith.addf %3, %5 : vector<40x128xf32>
    %cst_5 = arith.constant 0.000000e+00 : f32
    %7 = vector.broadcast %cst_5 : f32 to vector<40x128xf32>
    %8 = arith.maximumf %6, %7 : vector<40x128xf32>
    %c0_6 = arith.constant 0 : index
    %c0_7 = arith.constant 0 : index
    %9 = vector.load %arg4[%c0_6, %c0_7] : memref<40x128xf32, #tpu.memory_space<vmem>>, vector<40x128xf32>
    tpu.vector_store %arg4[%c0_6, %c0_7], %8 {strides = array<i32>} : memref<40x128xf32, #tpu.memory_space<vmem>>, vector<40x128xf32>,
    return
  }
  func.func @transform_0(%arg0: i32) -> (i32, i32) {
    %c0_i32 = arith.constant 0 : i32
    %c0_i32_0 = arith.constant 0 : i32
    return %arg0, %c0_i32 : i32, i32
  }
  func.func @transform_1(%arg0: i32) -> (i32, i32) {
    %c0_i32 = arith.constant 0 : i32
    %c0_i32_0 = arith.constant 0 : i32
    %c0_i32_1 = arith.constant 0 : i32
    return %c0_i32, %c0_i32_0 : i32, i32
  }
  func.func @transform_2(%arg0: i32) -> (i32, i32) {
    %c0_i32 = arith.constant 0 : i32
    %c0_i32_0 = arith.constant 0 : i32
    %c0_i32_1 = arith.constant 0 : i32
    return %c0_i32, %c0_i32_0 : i32, i32
  }
  func.func @transform_3(%arg0: i32) -> (i32, i32) {
    %c0_i32 = arith.constant 0 : i32
    %c0_i32_0 = arith.constant 0 : i32
    return %arg0, %c0_i32 : i32, i32
  }
}

</mosaic_0001>

<bundles_post_ra>
// kernel: tpu_custom_call.1
= control target key start
LH: loop header
LB: loop body
LE: loop exit
PB: predicated region body
PF: predicated region fallthrough
CT: control target
= control target key end

     0   :  { %8 = vsyncpa [#allocation3], 0  ;;  %s347_s0 = inlined_call_operand.hbm [shape: f32[40,96], index: 0, kind: input, shape index: {}]   ;;  %s348_s1 = inlined_call_operand.hbm [shape: bf16[96,128], index: 1, kind: input, shape index: {}]   ;;  %s349_s2 = inlined_call_operand.vmem [shape: f32[1,128], index: 2, kind: input, shape index: {}]   ;;  %s350_s3 = inlined_call_operand.hbm [shape: f32[40,128], index: 3, kind: output, shape index: {}]  }
   0x1   :  { %9 = vsyncpa [#allocation6], 0 }
   0x2   :  { %10 = vsyncpa [#allocation4], 0  ;;  %s15_s14 = sshll.u32 %s347_s0, 4  ;;  %s302_s15 = smov [#allocation2]   ;;  %s16_s14 = int_to_ptr.hbm [resolvable:$true] %s15_s14 }
   0x3   :  { %s17_s16 = sshll.u32 %s302_s15, 4  ;;  %s28_s19 = sshll.u32 %s348_s1, 4  ;;  %s18_s16 = int_to_ptr.vmem [resolvable:$true] %s17_s16  ;;  %s29_s19 = int_to_ptr.hbm [resolvable:$true] %s28_s19 }
   0x4   :  { %s303_s20 = smov 128   ;;  %s304_s21 = smov 8  }
   0x5   :  { %23 = dma.hbm_to_vmem [thread:$0]  %s16_s14, 640, %s18_s16, [#allocation3], %s303_s20, %s303_s20, %s304_s21  }
   0x6   :  { %s305_s22 = smov [#allocation5]   ;;  %s306_s24 = smov 64  }
   0x7   :  { %s30_s23 = sshll.u32 %s305_s22, 4  ;;  %s307_s0 = smov 4   ;;  %s31_s23 = int_to_ptr.vmem [resolvable:$true] %s30_s23 }
   0x8   :  { %36 = dma.hbm_to_vmem [thread:$0]  %s29_s19, 768, %s31_s23, [#allocation6], %s306_s24, %s306_s24, %s307_s0  }
   0x9   :  { %296 = dma.done.wait [#allocation3], 640  }
   0xa   :  { %297 = vsyncadd [#allocation3], 4294966656 }
   0xb   :  { %298 = dma.done.wait [#allocation6], 768  }
   0xc   :  { %299 = vsyncadd [#allocation6], 4294966528  ;;  %v203_v0 = vld [vmem:[#allocation5 + $0x28] sm:$0xff]  ;;  %v202_v1 = vld [vmem:[#allocation5 + $0x20] sm:$0xff]  ;;  %vm108_vm0 = vcmask 785408   ;;  %s308_s26 = smov [#allocation7]  }
   0xd   :  { %120 = vmatpush.bf16.msra.mxu0 %v203_v0  ;;  %204 = vmatpush.bf16.msra.mxu1 %v203_v0  ;;  %v201_v2 = vld [vmem:[#allocation5 + $0x18] sm:$0xff]  ;;  %v200_v3 = vld [vmem:[#allocation5 + $0x10] sm:$0xff]  ;;  %v199_v4 = vld [vmem:[#allocation5 + $0x8] sm:$0xff]  ;;  %s155_s27 = sshll.u32 %s308_s26, 4  ;;  %s156_s27 = int_to_ptr.vmem [resolvable:$true] %s155_s27 }
   0xe   :  { %205 = vmatpush.bf16.msra.mxu2 %v203_v0  ;;  %v198_v5 = vld [vmem:[#allocation5] sm:$0xff]  ;;  %v48_v6 = vld [vmem:[#allocation2] sm:$0xff]  ;;  %v50_v8 = vld [vmem:[#allocation2 + $0x10] sm:$0xff] }
   0xf   :  { %v49_v7 = vld [vmem:[#allocation2 + $0x8] sm:$0xff]  ;;  %v51_v9 = vld [vmem:[#allocation2 + $0x18] sm:$0xff]  ;;  %v52_v10 = vld [vmem:[#allocation2 + $0x20] sm:$0xff] }
  0x10   :  { %v53_v11 = vpack.c.bf16 %v49_v7, %v48_v6  ;;  %v54_v12 = vpack.c.bf16 %v51_v9, %v50_v8  ;;  %v55_v13 = vpack.c.bf16 %v52_v10, %v52_v10  ;;  %v223_v14 = vld [vmem:[%s349_s2] ss:$0 sm:$0xff]  ;;  %s157_s2 = sshll.u32 %s350_s3, 4  ;;  %s158_s2 = int_to_ptr.hbm [resolvable:$true] %s157_s2 }
  0x11   :  { %121 = vmatpush.bf16.msra.mxu0 %v202_v1  ;;  %206 = vmatpush.bf16.msra.mxu1 %v202_v1 }
  0x12   :  { %207 = vmatpush.bf16.msra.mxu2 %v202_v1 }
  0x15   :  { %122 = vmatpush.bf16.msra.mxu0 %v201_v2  ;;  %208 = vmatpush.bf16.msra.mxu1 %v201_v2 }
  0x16   :  { %209 = vmatpush.bf16.msra.mxu2 %v201_v2 }
  0x19   :  { %123 = vmatpush.bf16.msra.mxu0 %v200_v3  ;;  %210 = vmatpush.bf16.msra.mxu1 %v200_v3 }
  0x1a   :  { %211 = vmatpush.bf16.msra.mxu2 %v200_v3 }
  0x1d   :  { %124 = vmatpush.bf16.msra.mxu0 %v199_v4  ;;  %212 = vmatpush.bf16.msra.mxu1 %v199_v4 }
  0x1e   :  { %213 = vmatpush.bf16.msra.mxu2 %v199_v4 }
  0x21   :  { %125 = vmatpush.bf16.msra.mxu0 %v198_v5  ;;  %214 = vmatpush.bf16.msra.mxu1 %v198_v5 }
  0x22   :  { %215 = vmatpush.bf16.msra.mxu2 %v198_v5 }
  0x24   :  { %195 = vmatmul.msk.bf16.vlgmr.msra.gmra.mxu0 %vm108_vm0, %v53_v11  ;;  %196 = vmatmul.msk.bf16.vlgmr.msra.gmra.mxu1 %vm108_vm0, %v54_v12 }
  0x25   :  { %197 = vmatmul.msk.bf16.vlgmr.msra.gmra.mxu2 %vm108_vm0, %v55_v13 }
  0xa1   :  { %v127_v15 = vpop.f32.mrf.mxu0  ;;  %v132_v16 = vpop.f32.mrf.mxu1 }
  0xa2   :  { %v128_v17 = vadd.f32 %v223_v14, %v127_v15  ;;  %v133_v18 = vadd.f32 %v223_v14, %v132_v16 }
  0xa4   :  { %v141_v19 = vmax.f32 %v128_v17, 0.0  ;;  %v143_v20 = vmax.f32 %v133_v18, 0.0 }
  0xa6   :  { %146 = vst [vmem:[#allocation7] sm:$0xff] %v141_v19 }
  0xa7   :  { %148 = vst [vmem:[#allocation7 + $0x10] sm:$0xff] %v143_v20 }
  0xa8   :  { %v137_v21 = vpop.f32.mrf.mxu2 }
  0xa9   :  { %v138_v22 = vadd.f32 %v223_v14, %v137_v21  ;;  %v129_v23 = vpop.f32.mrf.mxu0  ;;  %v134_v24 = vpop.f32.mrf.mxu1 }
  0xaa   :  { %v130_v25 = vadd.f32 %v223_v14, %v129_v23  ;;  %v135_v26 = vadd.f32 %v223_v14, %v134_v24 }
  0xab   :  { %v145_v27 = vmax.f32 %v138_v22, 0.0 }
  0xac   :  { %v142_v28 = vmax.f32 %v130_v25, 0.0  ;;  %v144_v29 = vmax.f32 %v135_v26, 0.0 }
  0xad   :  { %150 = vst [vmem:[#allocation7 + $0x20] sm:$0xff] %v145_v27 }
  0xae   :  { %147 = vst [vmem:[#allocation7 + $0x8] sm:$0xff] %v142_v28 }
  0xaf   :  { %149 = vst [vmem:[#allocation7 + $0x18] sm:$0xff] %v144_v29 }
  0xb0   :  { %v139_v30 = vpop.f32.mrf.mxu2  ;;  %163 = dma.vmem_to_hbm [thread:$0]  %s156_s27, 640, %s158_s2, [#allocation4], %s303_s20, %s303_s20, %s304_s21  }
  0xb1   :  { %300 = dma.done.wait [#allocation4], 640  }
  0xb2   :  { %301 = vsyncadd [#allocation4], 4294966656 }
  0xb3   :  { %168 = vsyncpa [#allocation3], 1 }
  0xb4   :  { %169 = vsyncpa [#allocation6], 1 }
  0xb5   :  { %170 = vsyncpa [#allocation4], 1 }

</bundles_post_ra>
